<compile_context>
chip_gen: v7x
topology: tpu7x:2x2x1
jax: 0.10.0
libtpu: 0.0.40
codegen_flags: <defaults>
</compile_context>

<pallas_src>
import jax
import jax.numpy as jnp
from jax.experimental import pallas as pl
from jax.experimental.pallas import tpu as pltpu


def _transpose_kernel(x_ref, o_ref):
    # x_ref block: (TS, TD); o_ref block: (TD, TS).  Pure 2-D XLU transpose.
    o_ref[...] = x_ref[...].T


def _chip_generation():
    """Best-effort TPU generation detection (tile targets only; never required)."""
    try:
        kind = jax.devices()[0].device_kind.lower()
    except Exception:
        return "unknown"
    if "7" in kind:
        return "v7x"
    if "v6" in kind:
        return "v6e"
    if "v5e" in kind or "v5 lite" in kind or "v5lite" in kind:
        return "v5e"
    return "other"


def _choose_tiles(S, D, itemsize, gen):
    """Lane-dense tiles sized per generation / dtype, grown when one dim is full."""
    if itemsize >= 4:
        target = 1024 if gen == "v7x" else 512
    else:
        target = 512  # review: 256 was overhead-dominated on every generation
    per_buf_budget = (2 << 20) if gen == "v5e" else (4 << 20)

    ts = S if S <= target else target
    td = D if D <= target else target

    # If one dim is a full-extent block, grow the other tile up to the
    # per-buffer budget: longer contiguous DMA runs, fewer grid steps.
    if td == D:
        cap = (per_buf_budget // max(1, D * itemsize)) // 128 * 128
        if cap > ts:
            ts = S if S <= cap else cap
    elif ts == S:
        cap = (per_buf_budget // max(1, S * itemsize)) // 128 * 128
        if cap > td:
            td = D if D <= cap else cap
    return ts, td


def transpose_pallas(x, dim0=1, dim1=2, *, tile_s=None, tile_d=None):
    """Pallas equivalent of HDMixer_.Transpose(dim0, dim1)(x).

    The HDMixer hot path -- Transpose(1, 2) on 3-D (B, S, D) activations -- is
    lowered to a tiled Pallas transpose; anything else (and tiny activations)
    falls back to XLA's native transpose, which fuses into neighbours.
    """
    nd = x.ndim
    d0, d1 = sorted((dim0 % nd, dim1 % nd))
    user_tiles = tile_s is not None or tile_d is not None

    if nd != 3 or (d0, d1) != (1, 2):
        # TODO(synk): non-(1,2) / non-3D transposes left to XLA (pure layout op).
        return jnp.swapaxes(x, dim0, dim1)

    B, S, D = x.shape
    itemsize = jnp.dtype(x.dtype).itemsize
    total_bytes = B * S * D * itemsize

    # Tiny / narrow activations: fixed pallas_call+grid overhead and masked
    # (<128-lane) stores dominate; XLA's transpose is faster and fusable.
    # Passing explicit tiles forces the Pallas path.
    if not user_tiles and (min(S, D) < 128 or total_bytes < (256 << 10)):
        return jnp.swapaxes(x, 1, 2)

    gen = _chip_generation()
    if user_tiles:
        ts = tile_s if tile_s is not None else (S if S <= 512 else 512)
        td = tile_d if tile_d is not None else (D if D <= 512 else 512)
    else:
        ts, td = _choose_tiles(S, D, itemsize, gen)

    # Lane/sublane rules: a tiled dim must be a multiple of 128; a full-extent
    # dim is exempt (the (8,128) full-array-dim exception).
    assert ts == S or ts % 128 == 0, f"tile_s={ts} must be S or a multiple of 128"
    assert td == D or td % 128 == 0, f"tile_d={td} must be D or a multiple of 128"

    # VMEM safety (also covers user-supplied tiles): in + out buffers.
    n_in_bufs = 3 if gen == "v7x" else 2
    live_bytes = (n_in_bufs + 2) * ts * td * itemsize
    if live_bytes > (48 << 20):
        raise ValueError(
            f"tile {ts}x{td} ({live_bytes >> 20} MiB live in VMEM) exceeds budget")

    compiler_kwargs = dict(dimension_semantics=("parallel", "parallel", "parallel"))
    if live_bytes > (12 << 20):
        # v5e's default scoped VMEM is only 16 MiB; ask for what we need.
        compiler_kwargs["vmem_limit_bytes"] = min(live_bytes + (8 << 20), 64 << 20)

    cost = pl.CostEstimate(flops=0, transcendentals=0,
                           bytes_accessed=2 * total_bytes)

    # Output-lane (S) grid axis innermost -> contiguous output HBM writeback.
    # Remainder blocks: OOB input garbage only ever transposes into OOB output
    # slots, which the partial writeback drops (pure element permutation).
    grid = (B, pl.cdiv(D, td), pl.cdiv(S, ts))

    def build(buffered_in):
        in_kwargs = {}
        if buffered_in is not None:
            in_kwargs["pipeline_mode"] = pl.Buffered(buffered_in)
        return pl.pallas_call(
            _transpose_kernel,
            out_shape=jax.ShapeDtypeStruct((B, D, S), x.dtype),
            grid=grid,
            in_specs=[pl.BlockSpec((pl.Squeezed(), ts, td),
                                   lambda b, d, s: (b, s, d), **in_kwargs)],
            out_specs=pl.BlockSpec((pl.Squeezed(), td, ts),
                                   lambda b, d, s: (b, d, s)),
            compiler_params=pltpu.CompilerParams(**compiler_kwargs),
            cost_estimate=cost,
        )

    if gen == "v7x":
        # Short per-step DMAs on v7x's 3.2 TB/s HBM benefit from a third input
        # buffer (costs one extra tile of VMEM).
        try:
            return build(3)(x)
        except Exception:
            pass  # TODO(synk): Buffered(3) rejected here; fall back to default depth.
    return build(None)(x)


class Transpose:
    """Mirror of the PyTorch nn.Module; no parameters.

    `contiguous` is a no-op under JAX: the result is always materialized
    (there is no strided-view semantics to preserve).
    """

    def __init__(self, *dims, contiguous=False):
        self.dims = dims
        self.contiguous = contiguous

    def __call__(self, x):
        return transpose_pallas(x, *self.dims)


if __name__ == "__main__":
    key = jax.random.PRNGKey(0)
    k1, k2, k3 = jax.random.split(key, 3)

    # 1) Tiny HDMixer-style activation (batch=2, seq=8, hidden=32): below the
    #    Pallas-worthwhile threshold -> XLA fallback path of the module.
    x = jax.random.normal(k1, (2, 8, 32), dtype=jnp.float32)
    mod = Transpose(1, 2, contiguous=True)
    y = jax.block_until_ready(mod(x))
    assert y.shape == (2, 32, 8), y.shape
    assert y.dtype == x.dtype
    assert jnp.array_equal(y, jnp.swapaxes(x, 1, 2))

    # 2) Pallas path with explicit 128x128 tiles and remainder blocks.
    x2 = jax.random.normal(k2, (2, 320, 192), dtype=jnp.float32)
    y2 = jax.block_until_ready(transpose_pallas(x2, 1, 2, tile_s=128, tile_d=128))
    assert y2.shape == (2, 192, 320), y2.shape
    assert jnp.array_equal(y2, jnp.swapaxes(x2, 1, 2))

    # 3) Pallas path with auto-chosen tiles (narrow dtype, both dims tiled,
    #    remainders in both).
    x3 = jax.random.normal(k3, (2, 1280, 640), dtype=jnp.float32).astype(jnp.bfloat16)
    y3 = jax.block_until_ready(transpose_pallas(x3, 1, 2))
    assert y3.shape == (2, 640, 1280), y3.shape
    assert jnp.array_equal(y3, jnp.swapaxes(x3, 1, 2))

    print("KERNEL_OK")
</pallas_src>

<mosaic_0001>
module attributes {stable_mosaic.version = 11 : i64} {
  func.func @_transpose_kernel(%arg0: i32, %arg1: i32, %arg2: i32, %arg3: memref<1x128x128xf32, #tpu.memory_space<vmem>>, %arg4: memref<1x128x128xf32, #tpu.memory_space<vmem>>) attributes {dimension_semantics = [#tpu.dimension_semantics<parallel>, #tpu.dimension_semantics<parallel>, #tpu.dimension_semantics<parallel>], iteration_bounds = array<i64: 2, 2, 3>, scalar_prefetch = 0 : i64, scratch_operands = 0 : i64, tpu.core_type = #tpu.core_type<tc>, window_params = [{transform_indices = @transform_0, window_bounds = array<i64: 1, 128, 128>}, {transform_indices = @transform_1, window_bounds = array<i64: 1, 128, 128>}]} {
    %c0 = arith.constant 0 : index
    %c0_0 = arith.constant 0 : index
    %c0_1 = arith.constant 0 : index
    %0 = vector.load %arg3[%c0, %c0_0, %c0_1] : memref<1x128x128xf32, #tpu.memory_space<vmem>>, vector<1x128x128xf32>
    %1 = vector.shape_cast %0 : vector<1x128x128xf32> to vector<128x128xf32>
    %2 = tpu.transpose %1, [1, 0] : vector<128x128xf32> -> vector<128x128xf32>
    %c0_2 = arith.constant 0 : index
    %c0_3 = arith.constant 0 : index
    %c0_4 = arith.constant 0 : index
    %3 = vector.load %arg4[%c0_2, %c0_3, %c0_4] : memref<1x128x128xf32, #tpu.memory_space<vmem>>, vector<1x128x128xf32>
    %4 = vector.shape_cast %3 : vector<1x128x128xf32> to vector<128x128xf32>
    %5 = vector.shape_cast %2 : vector<128x128xf32> to vector<1x128x128xf32>
    tpu.vector_store %arg4[%c0_2, %c0_3, %c0_4], %5 {strides = array<i32>} : memref<1x128x128xf32, #tpu.memory_space<vmem>>, vector<1x128x128xf32>,
    return
  }
  func.func @transform_0(%arg0: i32, %arg1: i32, %arg2: i32) -> (i32, i32, i32) {
    %c0_i32 = arith.constant 0 : i32
    return %arg0, %arg2, %arg1 : i32, i32, i32
  }
  func.func @transform_1(%arg0: i32, %arg1: i32, %arg2: i32) -> (i32, i32, i32) {
    %c0_i32 = arith.constant 0 : i32
    return %arg0, %arg1, %arg2 : i32, i32, i32
  }
}

</mosaic_0001>

<bundles_post_ra>
// kernel: tpu_custom_call.1
= control target key start
LH: loop header
LB: loop body
LE: loop exit
PB: predicated region body
PF: predicated region fallthrough
CT: control target
= control target key end

     0   :  { %s1305_s0 = inlined_call_operand.vmem [shape: f32[2,320,192], index: 0, kind: input, shape index: {}]   ;;  %s1306_s1 = inlined_call_operand.hbm [shape: f32[2,192,320], index: 1, kind: output, shape index: {}]  }
   0x1   :  { %1310 = sst [smem:[#allocation10_spill]] %s1305_s0 }
   0x2   :  { %6 = vsyncpa [#allocation4], 0 }
   0x3   :  { %8 = vsyncpa [#allocation4 + $0x1], 0  ;;  %s968_s6 = smov 0   ;;  %s970_s7 = smov 0  }
   0x4   :  { %s972_s8 = smov 0   ;;  %s974_s9 = smov 0  }
   0x5   :  { %s976_s10 = smov 0   ;;  %s978_s11 = smov 0  }
   0x6   :  { %s980_s12 = smov 0   ;;  %s982_s13 = smov 0  }
   0x7   :  { %s984_s14 = smov 0   ;;  %s986_s15 = smov 0  }
   0x8   :  { %s988_s16 = smov 0   ;;  %s990_s17 = smov 0  }
   0x9 LB: > { %s554_s18 = sadd.s32 4294967295, %s920_s17   ;;  %s26_s19 = sadd.s32 1, %s908_s14  ;;  %s920_s17 = sphi %s990_s17, %s14_s17   ;;  %s916_s16 = sphi %s988_s16, %s1336_s16   ;;  %s912_s15 = sphi %s986_s15, %s1335_s15   ;;  %s908_s14 = sphi %s984_s14, %s1334_s14   ;;  %s904_s13 = sphi %s982_s13, %s1333_s13   ;;  %s900_s12 = sphi %s980_s12, %s1332_s12   ;;  %s896_s11 = sphi %s978_s11, %s1331_s11   ;;  %s892_s10 = sphi %s976_s10, %s1330_s10   ;;  %s888_s9 = sphi %s974_s9, %s1329_s9   ;;  %s884_s8 = sphi %s972_s8, %s1328_s8   ;;  %s880_s7 = sphi %s970_s7, %s1327_s7   ;;  %s876_s6 = sphi %s968_s6, %s1326_s6  }
   0xa   : > { %p27_p0 = scmp.ge.s32.totalorder %s26_s19, 3  ;;  %s29_s20 = sadd.s32 1, %s912_s15 }
   0xb   : > { %s555_s21 = sadd.s32 4294967294, %s920_s17   ;;  %p51_p1 = scmp.ne.s32.totalorder %s892_s10, %s888_s9 }
   0xc   : > { %s1338_s19 = smov (%p27_p0, %s26_s19), 0  ;;  %s1340_s20 = smov (!%p27_p0, %s29_s20), %s912_s15 }
   0xd   : > { %1311 = sst [smem:[#allocation6_spill]] %s1338_s19  ;;  %s33_s22 = sadd.s32 1, %s916_s16 }
   0xe   : > { %p52_p2 = scmp.eq.s32.totalorder %s920_s17, 0  ;;  %p31_p3 = scmp.ge.s32.totalorder %s1340_s20, 2 }
   0xf   : > { %s38_s23 = ssub.s32 %s908_s14, %s1338_s19  ;;  %p84_p5 = scmp.ne.s32.totalorder %s884_s8, %s880_s7 }
  0x10   : > { %p1041_p4 = por %p52_p2, %p51_p1  ;;  %s1342_s20 = smov (%p31_p3, %s1340_s20), 0 }
  0x11   : > { %1313 = sst [smem:[#allocation7_spill]] %s1342_s20  ;;  %s1344_s22 = smov (!%p31_p3, %s33_s22), %s916_s16 }
  0x12   : > { %s40_s25 = ssub.s32 %s912_s15, %s1342_s20  ;;  %p85_p6 = scmp.eq.s32.totalorder %s554_s18, 11 }
  0x13   : > { %p35_p7 = scmp.ge.s32.totalorder %s1344_s22, 2  ;;  %p90_p8 = scmp.ne.s32.totalorder %s880_s7, %s876_s6 }
  0x14   : > { %p1054_p9 = por %p85_p6, %p84_p5  ;;  %p91_p10 = scmp.eq.s32.totalorder %s555_s21, 11 }
  0x15   : > { %s1346_s22 = smov (%p35_p7, %s1344_s22), 0  ;;  %s44_s27 = sadd.s32 1, %s892_s10 }
  0x16   : > { %1315 = sst [smem:[#allocation8_spill]] %s1346_s22  ;;  %p1061_p11 = por %p91_p10, %p90_p8 }
  0x17   : > { %s37_s29 = ssub.s32 %s916_s16, %s1346_s22  ;;  %s74_s30 = sadd.s32 1, %s884_s8 }
  0x18   : > { %s39_s2 = sor.u32 %s38_s23, %s37_s29  ;;  %s69_s3 = sor.u32 %s40_s25, %s37_s29 }
  0x19   : > { %s41_s4 = sor.u32 %s40_s25, %s39_s2  ;;  %s71_s5 = sor.u32 %s69_s3, %s38_s23 }
  0x1a   : > { %p42_p12 = scmp.eq.s32.totalorder %s41_s4, 0  ;;  %p72_p13 = scmp.eq.s32.totalorder %s71_s5, 0 }
  0x1b   : > { %p557_p0 = scmp.ge.s32.totalorder %s920_s17, 12 }
  0x1c   : > { %s1069_s18 = scalar_select %p42_p12, %s892_s10, %s44_s27  }
  0x1d   : > { %s1072_s20 = scalar_select %p72_p13, %s884_s8, %s74_s30  }
  0x1e   : > { %1317 = sst [smem:[#allocation9_spill]] %s1069_s18  ;;  %107 = sbr.rel (%p557_p0) target bundleno = 93 (0x5d), region = 16 }
  0x25   : > { %110 = sbr.rel (!%p1041_p4) target bundleno = 93 (0x5d), region = 20  ;;  %s112_s21 = sand.u32 (%p1041_p4), 1, %s892_s10  }
  0x26   : > { %s559_s25 = sshll.u32 (%p1041_p4), %s908_s14, 4  ;;  %s558_s23 = sshll.u32 (%p1041_p4), %s112_s21, 7 }
  0x27   : > { %s116_s29 = ssub.s32 (%p1041_p4), 40, %s559_s25  ;;  %s587_s27 = sshll.u32 (%p1041_p4), %s908_s14, 5 }
  0x28   : > { %p117_p1 = scmp.lt.s32.totalorder (%p1041_p4), %s116_s29, 16  ;;  %s590_s2 = smul.u32 (%p1041_p4), 80, %s916_s16 }
  0x29   : > { %s122_s30 = sadd.s32 (%p1041_p4), %s912_s15, %s587_s27  ;;  %s1318_s0 = sld [smem:[#allocation10_spill]] (%p1041_p4) }
  0x2a   : > { %s124_s4 = sadd.s32 (%p1041_p4), %s590_s2, %s122_s30  ;;  %s1090_s18 = scalar_lea.vmem (%p1041_p4), [#allocation2], %s558_s23  }
  0x2b   : > { %s563_s24 = sshll.u32 (%p1041_p4), %s124_s4, 3 }
  0x2c   : > { %s1348_s29 = smov (!%p117_p1, %s116_s29), 16 }
  0x2d   : > { %s560_s3 = sshll.u32 %s1348_s29, 7 }
  0x2e   : > { %p564_p2 = scmp.eq.s32.totalorder %s560_s3, 0 }
  0x2f   : > { %s1088_s19 = scalar_lea.vmem %s1318_s0, %s563_s24   ;;  %s1093_s21 = sshrl.u32 (!%p564_p2), %s1348_s29, 4 }
  0x30   : > { %129 = sbr.rel (%p564_p2) target bundleno = 93 (0x5d), region = 24  ;;  %p565_p3 = scmp.le.s32.totalorder (!%p564_p2), %s1093_s21, 0 }
  0x37   : > { %493 = sbr.rel (%p565_p3) target bundleno = 72 (0x48), region = 118  ;;  %s1319_s25 = smov (!%p565_p3), %s1090_s18 }
  0x38   : > { %s1320_s27 = smov (!%p565_p3), %s1088_s19  ;;  %s1102_s2 = smov (!%p565_p3), 0  }
  0x39   : > { %s1104_s22 = smov (!%p565_p3), 0  }
  0x3e LB: >> { %v221_v0 = vld [vmem:[%s928_s27] sm:$0xff]  ;;  %v223_v1 = vld [vmem:[%s928_s27 + $0x10] sm:$0xff]  ;;  %s253_s23 = sadd.s32 1, %s932_s2  ;;  %s215_s22 = sadd.s32 1, %s936_s22   ;;  %s936_s22 = sphi %s1104_s22, %s215_s22   ;;  %s932_s2 = sphi %s1102_s2, %s1321_s2   ;;  %s928_s27 = sphi %s1320_s27, %s258_s27   ;;  %s924_s25 = sphi %s1319_s25, %s259_s25  }
  0x3f   : >> { %v225_v2 = vld [vmem:[%s928_s27 + $0x20] sm:$0xff]  ;;  %222 = vst [vmem:[%s924_s25] sm:$0xff] %v221_v0  ;;  %224 = vst [vmem:[%s924_s25 + $0x8] sm:$0xff] %v223_v1  ;;  %v227_v3 = vld [vmem:[%s928_s27 + $0x30] sm:$0xff]  ;;  %p254_p4 = scmp.ge.s32.totalorder %s253_s23, %s1093_s21  ;;  %p214_p5 = scmp.ge.s32.totalorder %s215_s22, %s1093_s21 }
  0x40   : >> { %226 = vst [vmem:[%s924_s25 + $0x10] sm:$0xff] %v225_v2  ;;  %v229_v4 = vld [vmem:[%s928_s27 + $0x40] sm:$0xff]  ;;  %v231_v5 = vld [vmem:[%s928_s27 + $0x50] sm:$0xff]  ;;  %228 = vst [vmem:[%s924_s25 + $0x18] sm:$0xff] %v227_v3 }
  0x41   : >> { %230 = vst [vmem:[%s924_s25 + $0x20] sm:$0xff] %v229_v4  ;;  %232 = vst [vmem:[%s924_s25 + $0x28] sm:$0xff] %v231_v5  ;;  %v233_v6 = vld [vmem:[%s928_s27 + $0x60] sm:$0xff]  ;;  %v235_v7 = vld [vmem:[%s928_s27 + $0x70] sm:$0xff]  ;;  %s1350_s23 = smov (%p254_p4, %s253_s23), 0  ;;  %217 = sbr.rel (!%p214_p5) target bundleno = 62 (0x3e), region = 124 }
  0x42   : >> { %v237_v8 = vld [vmem:[%s928_s27 + $0x80] sm:$0xff]  ;;  %234 = vst [vmem:[%s924_s25 + $0x30] sm:$0xff] %v233_v6  ;;  %236 = vst [vmem:[%s924_s25 + $0x38] sm:$0xff] %v235_v7  ;;  %v239_v9 = vld [vmem:[%s928_s27 + $0x90] sm:$0xff]  ;;  %s566_s30 = sshll.u32 %s1350_s23, 8  ;;  %s567_s3 = sshll.u32 %s1350_s23, 7 }
  0x43   : >> { %238 = vst [vmem:[%s924_s25 + $0x40] sm:$0xff] %v237_v8  ;;  %v241_v10 = vld [vmem:[%s928_s27 + $0xa0] sm:$0xff]  ;;  %v243_v11 = vld [vmem:[%s928_s27 + $0xb0] sm:$0xff]  ;;  %240 = vst [vmem:[%s924_s25 + $0x48] sm:$0xff] %v239_v9  ;;  %s1321_s2 = smov %s1350_s23 }
  0x44   : >> { %242 = vst [vmem:[%s924_s25 + $0x50] sm:$0xff] %v241_v10  ;;  %244 = vst [vmem:[%s924_s25 + $0x58] sm:$0xff] %v243_v11  ;;  %v245_v12 = vld [vmem:[%s928_s27 + $0xc0] sm:$0xff]  ;;  %v247_v13 = vld [vmem:[%s928_s27 + $0xd0] sm:$0xff] }
  0x45   : >> { %v249_v14 = vld [vmem:[%s928_s27 + $0xe0] sm:$0xff]  ;;  %246 = vst [vmem:[%s924_s25 + $0x60] sm:$0xff] %v245_v12  ;;  %248 = vst [vmem:[%s924_s25 + $0x68] sm:$0xff] %v247_v13  ;;  %v251_v15 = vld [vmem:[%s928_s27 + $0xf0] sm:$0xff]  ;;  %s258_s27 = scalar_lea.vmem %s1088_s19, %s566_s30  }
  0x46   : >> { %250 = vst [vmem:[%s924_s25 + $0x70] sm:$0xff] %v249_v14  ;;  %252 = vst [vmem:[%s924_s25 + $0x78] sm:$0xff] %v251_v15  ;;  %s259_s25 = scalar_lea.vmem %s1090_s18, %s567_s3 [#allocation2]  }
  0x48 PF: > { %s1162_s4 = sand.u32 15, %s1348_s29   ;;  %s588_s24 = sshll.u32 %s1093_s21, 8 }
  0x49   : > { %s1166_s5 = scalar_lea.vmem %s1088_s19, %s588_s24   ;;  %s589_s30 = sshll.u32 %s1093_s21, 7 }
  0x4a   : > { %s266_s3 = scalar_lea.vmem %s1090_s18, %s589_s30 [#allocation2]   ;;  %p571_p6 = scmp.le.s32.totalorder %s1162_s4, 0 }
  0x4b   : > { %s938_s23 = smov (!%p571_p6), %s266_s3   ;;  %s942_s22 = smov (!%p571_p6), %s1166_s5  }
  0x4c   : > { %507 = sbr.rel (%p571_p6) target bundleno = 93 (0x5d), region = 129  ;;  %s946_s0 = smov (!%p571_p6), 0  }
  0x4d   : > { %s950_s25 = smov (!%p571_p6), 0  }
  0x53 LB: >> { %v276_v16 = vld [vmem:[%s944_s22] sm:$0xff]  ;;  %s278_s19 = sadd.s32 1, %s948_s0  ;;  %s270_s25 = sadd.s32 1, %s952_s25   ;;  %s952_s25 = sphi %s950_s25, %s270_s25   ;;  %s948_s0 = sphi %s946_s0, %s947_s0   ;;  %s944_s22 = sphi %s942_s22, %s283_s22   ;;  %s940_s23 = sphi %s938_s23, %s284_s23  }
  0x54   : >> { %277 = vst [vmem:[%s940_s23] sm:$0xff] %v276_v16  ;;  %p279_p7 = scmp.ge.s32.totalorder %s278_s19, %s1162_s4  ;;  %p269_p8 = scmp.ge.s32.totalorder %s270_s25, %s1162_s4 }
  0x56   : >> { %s1352_s19 = smov (%p279_p7, %s278_s19), 0  ;;  %272 = sbr.rel (!%p269_p8) target bundleno = 83 (0x53), region = 135 }
  0x57   : >> { %s572_s18 = sshll.u32 %s1352_s19, 4  ;;  %s573_s29 = sshll.u32 %s1352_s19, 3 }
  0x58   : >> { %s283_s22 = scalar_lea.vmem %s1166_s5, %s572_s18   ;;  %s284_s23 = scalar_lea.vmem %s266_s3, %s573_s29 [#allocation2]  }
  0x59   : >> { %s947_s0 = smov %s1352_s19  }
  0x5d PF: > { %p574_p10 = scmp.ge.s32.totalorder %s920_s17, 1  ;;  %p289_p12 = scmp.lt.s32.totalorder %s920_s17, 13 }
  0x5f   : > { %p290_p13 = pnand %p574_p10, %p289_p12 }
  0x60   : > { %s296_s0 = sand.u32 (!%p290_p13), 1, %s888_s9   ;;  %s312_s2 = sand.u32 (!%p290_p13), 1, %s880_s7  }
  0x61   : > { %293 = sbr.rel (%p290_p13) target bundleno = 322 (0x142), region = 72  ;;  %s575_s21 = sshll.u32 (!%p290_p13), %s296_s0, 7 }
  0x62   : > { %s1178_s27 = scalar_lea.vmem (!%p290_p13), [#allocation2], %s575_s21  ;;  %s576_s9 = sshll.u32 (!%p290_p13), %s312_s2, 7 }
  0x63   : > { %v325_v17 = vld [vmem:[%s1178_s27] sm:$0xff] (!%p290_p13)  ;;  %v326_v18 = vld [vmem:[%s1178_s27 + $0x8] sm:$0xff] (!%p290_p13)  ;;  %v327_v19 = vld [vmem:[%s1178_s27 + $0x10] sm:$0xff] (!%p290_p13)  ;;  %s1199_s4 = scalar_lea.vmem (!%p290_p13), [#allocation3], %s576_s9  ;;  %s1219_s24 = scalar_lea.sflag (!%p290_p13), [#allocation4], %s312_s2 }
  0x64   : > { %341 = vxpose.xlu0.b32.start [1/16] (!%p290_p13), %v325_v17, 128  ;;  %v328_v20 = vld [vmem:[%s1178_s27 + $0x18] sm:$0xff] (!%p290_p13)  ;;  %v329_v21 = vld [vmem:[%s1178_s27 + $0x20] sm:$0xff] (!%p290_p13)  ;;  %v330_v22 = vld [vmem:[%s1178_s27 + $0x28] sm:$0xff] (!%p290_p13) }
  0x65   : > { %v331_v23 = vld [vmem:[%s1178_s27 + $0x30] sm:$0xff] (!%p290_p13)  ;;  %v332_v24 = vld [vmem:[%s1178_s27 + $0x38] sm:$0xff] (!%p290_p13)  ;;  %v333_v25 = vld [vmem:[%s1178_s27 + $0x40] sm:$0xff] (!%p290_p13) }
  0x66   : > { %v334_v26 = vld [vmem:[%s1178_s27 + $0x48] sm:$0xff] (!%p290_p13)  ;;  %v335_v27 = vld [vmem:[%s1178_s27 + $0x50] sm:$0xff] (!%p290_p13)  ;;  %v336_v28 = vld [vmem:[%s1178_s27 + $0x58] sm:$0xff] (!%p290_p13) }
  0x67   : > { %v337_v29 = vld [vmem:[%s1178_s27 + $0x60] sm:$0xff] (!%p290_p13)  ;;  %v338_v30 = vld [vmem:[%s1178_s27 + $0x68] sm:$0xff] (!%p290_p13)  ;;  %v339_v31 = vld [vmem:[%s1178_s27 + $0x70] sm:$0xff] (!%p290_p13) }
  0x68   : > { %342 = vxpose.xlu0.b32.cont [2/16] %v326_v18, 128  ;;  %v340_v32 = vld [vmem:[%s1178_s27 + $0x78] sm:$0xff]  ;;  %s578_s5 = sshll.u32 (%p1054_p9), %s900_s12, 4 }
  0x69   : > { %s398_s30 = ssub.s32 (%p1054_p9), 24, %s578_s5 }
  0x6a   : > { %p399_p0 = scmp.lt.s32.totalorder (%p1054_p9), %s398_s30, 16 }
  0x6c   : > { %343 = vxpose.xlu0.b32.cont [3/16] %v327_v19, 128 }
  0x70   : > { %344 = vxpose.xlu0.b32.cont [4/16] %v328_v20, 128 }
  0x74   : > { %345 = vxpose.xlu0.b32.cont [5/16] %v329_v21, 128 }
  0x78   : > { %346 = vxpose.xlu0.b32.cont [6/16] %v330_v22, 128 }
  0x7c   : > { %347 = vxpose.xlu0.b32.cont [7/16] %v331_v23, 128 }
  0x80   : > { %348 = vxpose.xlu0.b32.cont [8/16] %v332_v24, 128 }
  0x84   : > { %349 = vxpose.xlu0.b32.cont [9/16] %v333_v25, 128 }
  0x88   : > { %350 = vxpose.xlu0.b32.cont [10/16] %v334_v26, 128 }
  0x8c   : > { %351 = vxpose.xlu0.b32.cont [11/16] %v335_v27, 128 }
  0x90   : > { %352 = vxpose.xlu0.b32.cont [12/16] %v336_v28, 128 }
  0x94   : > { %353 = vxpose.xlu0.b32.cont [13/16] %v337_v29, 128 }
  0x98   : > { %354 = vxpose.xlu0.b32.cont [14/16] %v338_v30, 128 }
  0x9c   : > { %355 = vxpose.xlu0.b32.cont [15/16] %v339_v31, 128 }
  0xa0   : > { %356 = vxpose.xlu0.b32.end [16/16] %v340_v32, 128 }
  0xe4   : > { %v357_v33 = vpop.trf.xlu0 }
  0xe5   : > { %373 = vst [vmem:[%s1199_s4] sm:$0xff] %v357_v33 }
  0xe8   : > { %v358_v34 = vpop.trf.xlu0 }
  0xe9   : > { %374 = vst [vmem:[%s1199_s4 + $0x8] sm:$0xff] %v358_v34 }
  0xec   : > { %v359_v35 = vpop.trf.xlu0 }
  0xed   : > { %375 = vst [vmem:[%s1199_s4 + $0x10] sm:$0xff] %v359_v35 }
  0xf0   : > { %v360_v36 = vpop.trf.xlu0 }
  0xf1   : > { %376 = vst [vmem:[%s1199_s4 + $0x18] sm:$0xff] %v360_v36 }
  0xf4   : > { %v361_v37 = vpop.trf.xlu0 }
  0xf5   : > { %377 = vst [vmem:[%s1199_s4 + $0x20] sm:$0xff] %v361_v37 }
  0xf8   : > { %v362_v38 = vpop.trf.xlu0 }
  0xf9   : > { %378 = vst [vmem:[%s1199_s4 + $0x28] sm:$0xff] %v362_v38 }
  0xfc   : > { %v363_v39 = vpop.trf.xlu0 }
  0xfd   : > { %379 = vst [vmem:[%s1199_s4 + $0x30] sm:$0xff] %v363_v39 }
 0x100   : > { %v364_v40 = vpop.trf.xlu0 }
 0x101   : > { %380 = vst [vmem:[%s1199_s4 + $0x38] sm:$0xff] %v364_v40 }
 0x104   : > { %v365_v41 = vpop.trf.xlu0 }
 0x105   : > { %381 = vst [vmem:[%s1199_s4 + $0x40] sm:$0xff] %v365_v41 }
 0x108   : > { %v366_v42 = vpop.trf.xlu0 }
 0x109   : > { %382 = vst [vmem:[%s1199_s4 + $0x48] sm:$0xff] %v366_v42 }
 0x10c   : > { %v367_v43 = vpop.trf.xlu0 }
 0x10d   : > { %383 = vst [vmem:[%s1199_s4 + $0x50] sm:$0xff] %v367_v43 }
 0x110   : > { %v368_v44 = vpop.trf.xlu0 }
 0x111   : > { %384 = vst [vmem:[%s1199_s4 + $0x58] sm:$0xff] %v368_v44 }
 0x114   : > { %v369_v45 = vpop.trf.xlu0 }
 0x115   : > { %385 = vst [vmem:[%s1199_s4 + $0x60] sm:$0xff] %v369_v45 }
 0x118   : > { %v370_v46 = vpop.trf.xlu0 }
 0x119   : > { %386 = vst [vmem:[%s1199_s4 + $0x68] sm:$0xff] %v370_v46 }
 0x11b   : > { %396 = sbr.rel (!%p1054_p9) target bundleno = 322 (0x142), region = 80 }
 0x11c   : > { %v371_v47 = vpop.trf.xlu0 }
 0x11d   : > { %387 = vst [vmem:[%s1199_s4 + $0x70] sm:$0xff] %v371_v47 }
 0x120   : > { %v372_v48 = vpop.trf.xlu0 }
 0x121   : > { %388 = vst [vmem:[%s1199_s4 + $0x78] sm:$0xff] %v372_v48 }
 0x122   : > { %s1354_s30 = smov (!%p399_p0, %s398_s30), 16 }
 0x123   : > { %s1224_s3 = sshll.u32 %s1354_s30, 7 }
 0x124   : > { %s403_s23 = ssub.s32 2048, %s1224_s3 }
 0x125   : > { %404 = vsyncadd %s1219_s24, %s403_s23  ;;  %p580_p1 = scmp.ne.s32.totalorder %s1224_s3, 0  ;;  %s591_s26 = smul.u32 48, %s900_s12 }
 0x126   : > { %s592_s22 = smul.u32 72, %s904_s13  ;;  %s413_s25 = sshll.u32 %s1199_s4, 4  ;;  %s1233_s25 = int_to_ptr.vmem [resolvable:$true] %s413_s25 }
 0x127   : > { %s407_s19 = sadd.s32 %s896_s11, %s591_s26  ;;  %s762_s2 = scalar_lea.vmem %s1233_s25, %s1224_s3 }
 0x128   : > { %s409_s18 = sadd.s32 %s592_s22, %s407_s19  ;;  %p763_p9 = scmp.ne.s32.totalorder %s1233_s25, %s762_s2 }
 0x129   : > { %s582_s29 = sshll.u32 %s409_s18, 7  ;;  %s954_s12 = smov [#allocation3]  }
 0x12a   : > { %s1238_s27 = scalar_lea.hbm %s1306_s1, %s582_s29  ;;  %p764_p2 = pnand %p763_p9, %p580_p1 }
 0x12b   : > { %s766_s13 = sshll.u32 %s954_s12, 4  ;;  %s767_s13 = int_to_ptr.vmem [resolvable:$false] %s766_s13 }
 0x12c   : > { %p765_p3 = pneg %p764_p2  ;;  %s768_s11 = scalar_lea.vmem %s767_s13, 4096 }
 0x12d   : > { %p769_p4 = scmp.lt.s32.totalorder %s1233_s25, %s767_s13  ;;  %p770_p5 = scmp.lt.s32.totalorder %s768_s11, %s762_s2 }
 0x12f   : > { %p771_p6 = por %p770_p5, %p769_p4 }
 0x131   : > { %p772_p7 = pnand %p771_p6, %p765_p3 }
 0x133   : > { %775 = shalt.err (!%p772_p7)
}
 0x134   : > { %s776_s9 = scalar_lea.hbm %s1238_s27, %s1224_s3  ;;  %s780_s30 = scalar_lea.hbm %s1306_s1, 18432 }
 0x135   : > { %p777_p8 = scmp.ne.s32.totalorder %s1238_s27, %s776_s9  ;;  %p781_p13 = scmp.lt.u32.totalorder %s1238_s27, %s1306_s1 }
 0x136   : > { %p782_p0 = scmp.lt.u32.totalorder %s780_s30, %s776_s9  ;;  %p784_p2 = scmp.lt.u32.totalorder %s776_s9, %s1238_s27 }
 0x137   : > { %p778_p10 = pnand %p777_p8, %p580_p1 }
 0x138   : > { %p783_p9 = por %p782_p0, %p781_p13 }
 0x139   : > { %p779_p12 = pneg %p778_p10 }
 0x13a   : > { %p785_p3 = por %p784_p2, %p783_p9 }
 0x13c   : > { %p786_p4 = pnand %p785_p3, %p779_p12 }
 0x13e   : > { %789 = shalt.err (!%p786_p4)
}
 0x13f   : > { %s955_s22 = smov 128   ;;  %s956_s19 = smov 384  }
 0x140   : > { %s957_s18 = smov 8  }
 0x141   : > { %419 = dma.vmem_to_hbm [thread:$0]  (%p580_p1), %s1233_s25, %s1224_s3, %s1238_s27, %s1219_s24, %s955_s22, %s956_s19, %s957_s18  }
 0x142 PF: > { %p598_p5 = scmp.ge.s32.totalorder %s920_s17, 2  ;;  %s428_s29 = sand.u32 1, %s876_s6  }
 0x143   : > { %s429_s0 = scalar_lea.sflag [#allocation4], %s428_s29 }
 0x144   : > { %p595_p6 = pnand %p598_p5, %p1061_p11 }
 0x146   : > { %871 = dma.done.wait (!%p595_p6), %s429_s0, 2048  }
 0x147   : > { %873 = vsyncadd (!%p595_p6), %s429_s0, 4294965248  ;;  %s14_s17 = sadd.s32 1, %s920_s17   ;;  %s1322_s24 = sld [smem:[#allocation9_spill]] }
 0x148   : > { %p11_p7 = scmp.ge.s32.totalorder %s14_s17, 14   ;;  %s1323_s3 = sld [smem:[#allocation6_spill]] }
 0x149   : > { %s1324_s25 = sld [smem:[#allocation7_spill]]  ;;  %s1325_s21 = sld [smem:[#allocation8_spill]] }
 0x14a   : > { %s1326_s6 = smov %s880_s7  ;;  %s1327_s7 = smov %s884_s8 }
 0x14b   : > { %s1328_s8 = smov %s1072_s20  ;;  %s1329_s9 = smov %s892_s10 }
 0x14c   : > { %s1331_s11 = smov %s908_s14  ;;  %s1332_s12 = smov %s912_s15 }
 0x14d   : > { %s1330_s10 = smov %s1322_s24  ;;  %s1333_s13 = smov %s916_s16 }
 0x14e   : > { %s1334_s14 = smov %s1323_s3  ;;  %13 = sbr.rel (!%p11_p7) target bundleno = 9 (0x9), region = 146 }
 0x14f   : > { %s1335_s15 = smov %s1324_s25  ;;  %s1336_s16 = smov %s1325_s21 }
 0x155   :  { %434 = vsyncpa [#allocation4], 1 }
 0x156   :  { %436 = vsyncpa [#allocation4 + $0x1], 1 }

</bundles_post_ra>
